<compile_context>
chip_gen: v6e
topology: v6e:2x2x1
jax: 0.10.0
libtpu: 0.0.40
codegen_flags: <defaults>
</compile_context>

<pallas_src>
import jax
import jax.numpy as jnp
from jax import lax
from jax.experimental import pallas as pl
from jax.experimental.pallas import tpu as pltpu

SMOOTH = 1.0  # diceCoeff smooth_value default


def _cdiv(a, b):
    return -(-a // b)


def _round_up(x, m):
    return _cdiv(x, m) * m


def _device_kind():
    try:
        return jax.devices()[0].device_kind.lower()
    except Exception:
        return ""


def _make_kernel(*, sub, tile_hw, fold_w, tiles_per_split, total_tiles,
                 tail_cols, has_dup):
    """Kernel factory: all tiling facts are baked in as Python constants."""
    has_tail = tail_cols != tile_hw          # last spatial tile is ragged
    tail_full_folds = tail_cols // 128
    tail_rem = tail_cols % 128
    n_groups = fold_w // 128
    folds = tile_hw // fold_w

    def kernel(pred_ref, gt_ref, acc_ref):
        k = pl.program_id(2)

        @pl.when(k == 0)
        def _():
            acc_ref[...] = jnp.zeros_like(acc_ref)

        # Global spatial-tile index of this grid step.
        t = pl.program_id(1) * tiles_per_split + k

        def add_partials(tp, fp, fn):
            acc_ref[0, 0, :, :] += tp
            acc_ref[0, 1, :, :] += fp
            acc_ref[0, 2, :, :] += fn

        def accum_full():
            zero = jnp.zeros((sub, 128), jnp.float32)

            def body(f, carry):
                tp, fp, fn = carry
                off = pl.multiple_of(f * fold_w, fold_w)
                p = pred_ref[:, pl.ds(off, fold_w)].astype(jnp.float32)
                g = gt_ref[:, pl.ds(off, fold_w)].astype(jnp.float32)
                gp = g * p
                ap = jnp.abs(p)
                for j in range(n_groups):   # static 128-lane vreg groups
                    sl = slice(j * 128, (j + 1) * 128)
                    tp = tp + gp[:, sl]
                    fp = fp + ap[:, sl]
                    fn = fn + g[:, sl]
                return tp, fp, fn

            tp, fp, fn = lax.fori_loop(0, folds, body, (zero, zero, zero),
                                       unroll=max(1, min(4, folds)))
            add_partials(tp, fp, fn)

        def accum_tail():
            zero = jnp.zeros((sub, 128), jnp.float32)

            def body(f, carry):
                tp, fp, fn = carry
                off = pl.multiple_of(f * 128, 128)
                p = pred_ref[:, pl.ds(off, 128)].astype(jnp.float32)
                g = gt_ref[:, pl.ds(off, 128)].astype(jnp.float32)
                return tp + g * p, fp + jnp.abs(p), fn + g

            tp, fp, fn = lax.fori_loop(0, tail_full_folds, body,
                                       (zero, zero, zero),
                                       unroll=max(1, min(8, tail_full_folds)))
            if tail_rem:
                off = tail_full_folds * 128
                lane = lax.broadcasted_iota(jnp.int32, (sub, 128), 1)
                m = lane < tail_rem          # static mask, columns >= HW -> 0
                p = jnp.where(m, pred_ref[:, pl.ds(off, 128)].astype(jnp.float32), 0.0)
                g = jnp.where(m, gt_ref[:, pl.ds(off, 128)].astype(jnp.float32), 0.0)
                tp = tp + g * p
                fp = fp + jnp.abs(p)
                fn = fn + g
            add_partials(tp, fp, fn)

        full_bound = total_tiles - 1 if has_tail else total_tiles
        if has_tail or has_dup:
            # Skip duplicated (clamped) tiles; route the ragged tail tile to
            # the masked accumulator.
            @pl.when(t < full_bound)
            def _():
                accum_full()
        else:
            accum_full()

        if has_tail:
            @pl.when(t == total_tiles - 1)
            def _():
                accum_tail()

    return kernel


def segmentation_loss(y_pred, y_true, *, num_splits=None,
                      target_block_bytes=None):
    """1 - mean dice score, matching SegmentationLoss(num_classes=C,
    activation=None, loss_type='dice') forward semantics."""
    N, C, H, W = y_pred.shape
    assert y_true.shape == y_pred.shape
    HW = H * W
    NC = N * C

    kind = _device_kind()
    if num_splits is None:
        multi_tc = ("v7" in kind) or ("v4" in kind) or ("v5p" in kind)
        num_splits = 2 if multi_tc else 1
    if target_block_bytes is None:
        target_block_bytes = (8 << 20) if "v7" in kind else (4 << 20)

    pred = y_pred.reshape(NC, HW)    # metadata-only reshape, native dtype
    gt = y_true.reshape(NC, HW)

    itemsize_p = jnp.dtype(pred.dtype).itemsize
    itemsize_g = jnp.dtype(gt.dtype).itemsize
    # Native sublane packing: 8 rows for 4-byte, 16 for 2-byte, 32 for 1-byte.
    sub = max(8, 32 // max(1, min(itemsize_p, itemsize_g)))
    nc_blocks = _cdiv(NC, sub)

    # Spatial tile: ~target_block_bytes per input block, never wider than one
    # split's share of HW; multiple of 512 when possible (4 vregs per row per
    # inner-loop step), otherwise multiple of 128.
    max_item = max(itemsize_p, itemsize_g)
    per_split = _round_up(_cdiv(HW, num_splits), 128)
    tile_hw = min(target_block_bytes // (sub * max_item), per_split)
    tile_hw = max(tile_hw, 128)
    if tile_hw >= 512:
        tile_hw -= tile_hw % 512
    else:
        tile_hw -= tile_hw % 128
    fold_w = 512 if tile_hw % 512 == 0 else (256 if tile_hw % 256 == 0 else 128)

    total_tiles = _cdiv(HW, tile_hw)
    tiles_per_split = _cdiv(total_tiles, num_splits)
    has_dup = num_splits * tiles_per_split > total_tiles
    tail_cols = HW - (total_tiles - 1) * tile_hw

    kernel = _make_kernel(sub=sub, tile_hw=tile_hw, fold_w=fold_w,
                          tiles_per_split=tiles_per_split,
                          total_tiles=total_tiles, tail_cols=tail_cols,
                          has_dup=has_dup)

    if has_dup:
        # Clamp so no block starts past the array end; the kernel skips the
        # (few) duplicated tiles so they contribute nothing.
        def in_map(c, s, k):
            return (c, jnp.minimum(s * tiles_per_split + k, total_tiles - 1))
    else:
        def in_map(c, s, k):
            return (c, s * tiles_per_split + k)

    def out_map(c, s, k):
        return (c * num_splits + s, 0, 0, 0)

    block_bytes = sub * tile_hw * (itemsize_p + itemsize_g)
    vmem_limit = int(max(2 * block_bytes + (4 << 20), 16 << 20))

    partials = pl.pallas_call(
        kernel,
        out_shape=jax.ShapeDtypeStruct((nc_blocks * num_splits, 3, sub, 128),
                                       jnp.float32),
        grid_spec=pltpu.PrefetchScalarGridSpec(
            num_scalar_prefetch=0,
            grid=(nc_blocks, num_splits, tiles_per_split),
            in_specs=[
                pl.BlockSpec((sub, tile_hw), in_map),
                pl.BlockSpec((sub, tile_hw), in_map),
            ],
            out_specs=pl.BlockSpec((1, 3, sub, 128), out_map),
        ),
        compiler_params=pltpu.CompilerParams(
            dimension_semantics=("parallel", "parallel", "arbitrary"),
            vmem_limit_bytes=vmem_limit,
        ),
    )(pred, gt)

    # Finalize on tiny partials: fold splits + lanes, drop any ragged nc rows,
    # apply the dice formula and mean over all (n, c) entries.
    sums = partials.reshape(nc_blocks, num_splits, 3, sub, 128).sum(axis=(1, 4))
    sums = sums.transpose(1, 0, 2).reshape(3, nc_blocks * sub)[:, :NC]
    tp = jnp.abs(sums[0])     # |sum(g*p)| per (n, c): abs applied after the sum
    fp = sums[1]              # sum(|p|)
    fn = sums[2]              # sum(g)
    score = (2.0 * tp + SMOOTH) / (fp + fn + SMOOTH)
    return 1.0 - jnp.mean(score)


if __name__ == "__main__":
    key = jax.random.PRNGKey(0)
    k1, k2, k3, k4 = jax.random.split(key, 4)

    def ref_loss(y_pred, y_true):
        # Pure-JAX reference mirroring the per-class torch loop (activation=None).
        n, c = y_pred.shape[:2]
        pf = y_pred.reshape(n, c, -1).astype(jnp.float32)
        gf = y_true.reshape(n, c, -1).astype(jnp.float32)
        tp = jnp.abs(jnp.sum(gf * pf, axis=-1))
        fp = jnp.sum(jnp.abs(pf), axis=-1)
        fn = jnp.sum(gf, axis=-1)
        score = (2.0 * tp + SMOOTH) / (fp + fn + SMOOTH)
        return 1.0 - jnp.mean(score)

    # Case 1: shapes that tile exactly (no tail masking, no ragged nc rows).
    N, C, H, W = 2, 4, 16, 16
    y_pred = jax.random.normal(k1, (N, C, H, W), dtype=jnp.float32)
    labels = jax.random.randint(k2, (N, H, W), 0, C)
    y_true = jax.nn.one_hot(labels, C, dtype=jnp.float32).transpose(0, 3, 1, 2)
    loss = jax.block_until_ready(segmentation_loss(y_pred, y_true))
    ref = ref_loss(y_pred, y_true)
    assert jnp.allclose(loss, ref, rtol=1e-5, atol=1e-5), (loss, ref)

    # Case 2: ragged spatial size + NC not a multiple of the sublane block
    # (exercises the in-kernel tail mask and the partial nc block handling).
    N, C, H, W = 3, 3, 19, 19
    y_pred = jax.random.normal(k3, (N, C, H, W), dtype=jnp.float32)
    labels = jax.random.randint(k4, (N, H, W), 0, C)
    y_true = jax.nn.one_hot(labels, C, dtype=jnp.float32).transpose(0, 3, 1, 2)
    loss = jax.block_until_ready(segmentation_loss(y_pred, y_true))
    ref = ref_loss(y_pred, y_true)
    assert jnp.allclose(loss, ref, rtol=1e-5, atol=1e-5), (loss, ref)

    print("KERNEL_OK")
</pallas_src>

<mosaic_0001>
module attributes {stable_mosaic.version = 11 : i64} {
  func.func @kernel(%arg0: i32, %arg1: i32, %arg2: i32, %arg3: memref<8x256xf32, #tpu.memory_space<vmem>>, %arg4: memref<8x256xf32, #tpu.memory_space<vmem>>, %arg5: memref<1x3x8x128xf32, #tpu.memory_space<vmem>>) attributes {dimension_semantics = [#tpu.dimension_semantics<parallel>, #tpu.dimension_semantics<parallel>, #tpu.dimension_semantics<arbitrary>], iteration_bounds = array<i64: 1, 1, 1>, scalar_prefetch = 0 : i64, scratch_operands = 0 : i64, tpu.core_type = #tpu.core_type<tc>, window_params = [{transform_indices = @transform_0, window_bounds = array<i64: 8, 256>}, {transform_indices = @transform_1, window_bounds = array<i64: 8, 256>}, {transform_indices = @transform_2, window_bounds = array<i64: 1, 3, 8, 128>}]} {
    %c0_i32 = arith.constant 0 : i32
    %0 = arith.cmpi eq, %arg2, %c0_i32 : i32
    %1 = arith.extui %0 : i1 to i32
    %c0_i32_0 = arith.constant 0 : i32
    %2 = arith.cmpi ne, %1, %c0_i32_0 : i32
    scf.if %2 {
      %cst_25 = arith.constant 0.000000e+00 : f32
      %42 = vector.broadcast %cst_25 : f32 to vector<1x3x8x128xf32>
      %c0_26 = arith.constant 0 : index
      %c0_27 = arith.constant 0 : index
      %c0_28 = arith.constant 0 : index
      %c0_29 = arith.constant 0 : index
      %43 = vector.load %arg5[%c0_26, %c0_27, %c0_28, %c0_29] : memref<1x3x8x128xf32, #tpu.memory_space<vmem>>, vector<1x3x8x128xf32>
      tpu.vector_store %arg5[%c0_26, %c0_27, %c0_28, %c0_29], %42 {strides = array<i32>} : memref<1x3x8x128xf32, #tpu.memory_space<vmem>>, vector<1x3x8x128xf32>,
    } else {
    }
    %cst = arith.constant 0.000000e+00 : f32
    %3 = vector.broadcast %cst : f32 to vector<8x128xf32>
    %c0_i32_1 = arith.constant 0 : i32
    %c256_i32 = arith.constant 256 : i32
    %4 = arith.muli %c0_i32_1, %c256_i32 : i32
    %5 = tpu.assume_multiple %4, 256 : i32
    %c0 = arith.constant 0 : index
    %6 = arith.index_cast %5 : i32 to index
    %7 = vector.load %arg3[%c0, %6] : memref<8x256xf32, #tpu.memory_space<vmem>>, vector<8x256xf32>
    %c0_2 = arith.constant 0 : index
    %8 = arith.index_cast %5 : i32 to index
    %9 = vector.load %arg4[%c0_2, %8] : memref<8x256xf32, #tpu.memory_space<vmem>>, vector<8x256xf32>
    %10 = arith.mulf %9, %7 : vector<8x256xf32>
    %11 = math.absf %7 : vector<8x256xf32>
    %12 = vector.extract_strided_slice %10 {offsets = [0, 0], sizes = [8, 128], strides = [1, 1]} : vector<8x256xf32> to vector<8x128xf32>
    %13 = arith.addf %3, %12 : vector<8x128xf32>
    %14 = vector.extract_strided_slice %11 {offsets = [0, 0], sizes = [8, 128], strides = [1, 1]} : vector<8x256xf32> to vector<8x128xf32>
    %15 = arith.addf %3, %14 : vector<8x128xf32>
    %16 = vector.extract_strided_slice %9 {offsets = [0, 0], sizes = [8, 128], strides = [1, 1]} : vector<8x256xf32> to vector<8x128xf32>
    %17 = arith.addf %3, %16 : vector<8x128xf32>
    %18 = vector.extract_strided_slice %10 {offsets = [0, 128], sizes = [8, 128], strides = [1, 1]} : vector<8x256xf32> to vector<8x128xf32>
    %19 = arith.addf %13, %18 : vector<8x128xf32>
    %20 = vector.extract_strided_slice %11 {offsets = [0, 128], sizes = [8, 128], strides = [1, 1]} : vector<8x256xf32> to vector<8x128xf32>
    %21 = arith.addf %15, %20 : vector<8x128xf32>
    %22 = vector.extract_strided_slice %9 {offsets = [0, 128], sizes = [8, 128], strides = [1, 1]} : vector<8x256xf32> to vector<8x128xf32>
    %23 = arith.addf %17, %22 : vector<8x128xf32>
    %c1_i32 = arith.constant 1 : i32
    %c0_3 = arith.constant 0 : index
    %c0_4 = arith.constant 0 : index
    %c0_5 = arith.constant 0 : index
    %c0_6 = arith.constant 0 : index
    %24 = vector.load %arg5[%c0_3, %c0_4, %c0_5, %c0_6] : memref<1x3x8x128xf32, #tpu.memory_space<vmem>>, vector<1x1x8x128xf32>
    %25 = vector.shape_cast %24 : vector<1x1x8x128xf32> to vector<8x128xf32>
    %26 = arith.addf %25, %19 : vector<8x128xf32>
    %c0_7 = arith.constant 0 : index
    %c0_8 = arith.constant 0 : index
    %c0_9 = arith.constant 0 : index
    %c0_10 = arith.constant 0 : index
    %27 = vector.load %arg5[%c0_7, %c0_8, %c0_9, %c0_10] : memref<1x3x8x128xf32, #tpu.memory_space<vmem>>, vector<1x1x8x128xf32>
    %28 = vector.shape_cast %27 : vector<1x1x8x128xf32> to vector<8x128xf32>
    %29 = vector.shape_cast %26 : vector<8x128xf32> to vector<1x1x8x128xf32>
    tpu.vector_store %arg5[%c0_7, %c0_8, %c0_9, %c0_10], %29 {strides = array<i32>} : memref<1x3x8x128xf32, #tpu.memory_space<vmem>>, vector<1x1x8x128xf32>,
    %c0_11 = arith.constant 0 : index
    %c1 = arith.constant 1 : index
    %c0_12 = arith.constant 0 : index
    %c0_13 = arith.constant 0 : index
    %30 = vector.load %arg5[%c0_11, %c1, %c0_12, %c0_13] : memref<1x3x8x128xf32, #tpu.memory_space<vmem>>, vector<1x1x8x128xf32>
    %31 = vector.shape_cast %30 : vector<1x1x8x128xf32> to vector<8x128xf32>
    %32 = arith.addf %31, %21 : vector<8x128xf32>
    %c0_14 = arith.constant 0 : index
    %c1_15 = arith.constant 1 : index
    %c0_16 = arith.constant 0 : index
    %c0_17 = arith.constant 0 : index
    %33 = vector.load %arg5[%c0_14, %c1_15, %c0_16, %c0_17] : memref<1x3x8x128xf32, #tpu.memory_space<vmem>>, vector<1x1x8x128xf32>
    %34 = vector.shape_cast %33 : vector<1x1x8x128xf32> to vector<8x128xf32>
    %35 = vector.shape_cast %32 : vector<8x128xf32> to vector<1x1x8x128xf32>
    tpu.vector_store %arg5[%c0_14, %c1_15, %c0_16, %c0_17], %35 {strides = array<i32>} : memref<1x3x8x128xf32, #tpu.memory_space<vmem>>, vector<1x1x8x128xf32>,
    %c0_18 = arith.constant 0 : index
    %c2 = arith.constant 2 : index
    %c0_19 = arith.constant 0 : index
    %c0_20 = arith.constant 0 : index
    %36 = vector.load %arg5[%c0_18, %c2, %c0_19, %c0_20] : memref<1x3x8x128xf32, #tpu.memory_space<vmem>>, vector<1x1x8x128xf32>
    %37 = vector.shape_cast %36 : vector<1x1x8x128xf32> to vector<8x128xf32>
    %38 = arith.addf %37, %23 : vector<8x128xf32>
    %c0_21 = arith.constant 0 : index
    %c2_22 = arith.constant 2 : index
    %c0_23 = arith.constant 0 : index
    %c0_24 = arith.constant 0 : index
    %39 = vector.load %arg5[%c0_21, %c2_22, %c0_23, %c0_24] : memref<1x3x8x128xf32, #tpu.memory_space<vmem>>, vector<1x1x8x128xf32>
    %40 = vector.shape_cast %39 : vector<1x1x8x128xf32> to vector<8x128xf32>
    %41 = vector.shape_cast %38 : vector<8x128xf32> to vector<1x1x8x128xf32>
    tpu.vector_store %arg5[%c0_21, %c2_22, %c0_23, %c0_24], %41 {strides = array<i32>} : memref<1x3x8x128xf32, #tpu.memory_space<vmem>>, vector<1x1x8x128xf32>,
    return
  }
  func.func @transform_0(%arg0: i32, %arg1: i32, %arg2: i32) -> (i32, i32) {
    %c1_i32 = arith.constant 1 : i32
    %0 = arith.muli %arg1, %c1_i32 : i32
    %1 = arith.addi %0, %arg2 : i32
    %c0_i32 = arith.constant 0 : i32
    return %arg0, %1 : i32, i32
  }
  func.func @transform_1(%arg0: i32, %arg1: i32, %arg2: i32) -> (i32, i32) {
    %c1_i32 = arith.constant 1 : i32
    %0 = arith.muli %arg1, %c1_i32 : i32
    %1 = arith.addi %0, %arg2 : i32
    %c0_i32 = arith.constant 0 : i32
    return %arg0, %1 : i32, i32
  }
  func.func @transform_2(%arg0: i32, %arg1: i32, %arg2: i32) -> (i32, i32, i32, i32) {
    %c1_i32 = arith.constant 1 : i32
    %0 = arith.muli %arg0, %c1_i32 : i32
    %1 = arith.addi %0, %arg1 : i32
    %c0_i32 = arith.constant 0 : i32
    %c0_i32_0 = arith.constant 0 : i32
    %c0_i32_1 = arith.constant 0 : i32
    %c0_i32_2 = arith.constant 0 : i32
    return %1, %c0_i32, %c0_i32_0, %c0_i32_1 : i32, i32, i32, i32
  }
}

</mosaic_0001>

<bundles_post_ra>
// kernel: tpu_custom_call.1
= control target key start
LH: loop header
LB: loop body
LE: loop exit
PB: predicated region body
PF: predicated region fallthrough
CT: control target
= control target key end

     0   :  { %7 = vsyncpa [#allocation3], 0  ;;  %s204_s0 = inlined_call_operand.hbm [shape: f32[8,256], index: 0, kind: input, shape index: {}]   ;;  %s205_s1 = inlined_call_operand.hbm [shape: f32[8,256], index: 1, kind: input, shape index: {}]   ;;  %s206_s2 = inlined_call_operand.hbm [shape: f32[1,3,8,128], index: 2, kind: output, shape index: {}]  }
   0x1   :  { %8 = vsyncpa [#allocation6], 0 }
   0x2   :  { %9 = vsyncpa [#allocation4], 0  ;;  %s175_s9 = smov [#allocation2]   ;;  %s176_s11 = smov [#allocation5]  }
   0x3   :  { %s20_s10 = sshll.u32 %s175_s9, 4  ;;  %s34_s12 = sshll.u32 %s176_s11, 4  ;;  %s21_s10 = int_to_ptr.vmem [resolvable:$true] %s20_s10  ;;  %s35_s12 = int_to_ptr.vmem [resolvable:$true] %s34_s12 }
   0x4   :  { %s117_s13 = scalar_lea.vmem %s21_s10, 256  ;;  %p122_p1 = scmp.lt.s32.totalorder %s21_s10, %s21_s10 }
   0x5   :  { %p118_p0 = scmp.ne.s32.totalorder %s21_s10, %s117_s13  ;;  %p123_p2 = scmp.lt.s32.totalorder %s117_s13, %s117_s13 }
   0x7   :  { %p124_p3 = por %p123_p2, %p122_p1 }
   0x9   :  { %p125_p4 = pnand %p124_p3, %p118_p0 }
   0xb   :  { %128 = shalt.err (!%p125_p4)
}
   0xc   :  { %23 = dma.hbm_to_vmem [thread:$0]  %s204_s0, 256, %s21_s10, [#allocation3]  }
   0xd   :  { %s137_s16 = scalar_lea.vmem %s35_s12, 256  ;;  %p142_p6 = scmp.lt.s32.totalorder %s35_s12, %s35_s12 }
   0xe   :  { %p138_p5 = scmp.ne.s32.totalorder %s35_s12, %s137_s16  ;;  %p143_p7 = scmp.lt.s32.totalorder %s137_s16, %s137_s16 }
  0x10   :  { %p144_p8 = por %p143_p7, %p142_p6 }
  0x12   :  { %p145_p9 = pnand %p144_p8, %p138_p5 }
  0x14   :  { %148 = shalt.err (!%p145_p9)
}
  0x15   :  { %37 = dma.hbm_to_vmem [thread:$0]  %s205_s1, 256, %s35_s12, [#allocation6]  }
  0x16   :  { %169 = dma.done.wait [#allocation3], 256  }
  0x17   :  { %170 = vsyncadd [#allocation3], 4294967040 }
  0x18   :  { %171 = dma.done.wait [#allocation6], 256  }
  0x19   :  { %172 = vsyncadd [#allocation6], 4294967040  ;;  %v56_v0 = vld [vmem:[#allocation2] sm:$0xff]  ;;  %v57_v1 = vld [vmem:[#allocation2 + $0x8] sm:$0xff]  ;;  %s177_s0 = smov [#allocation7]  }
  0x1a   :  { %v58_v2 = vld [vmem:[#allocation5] sm:$0xff]  ;;  %v59_v3 = vld [vmem:[#allocation5 + $0x8] sm:$0xff]  ;;  %v62_v5 = vand.u32 2147483647, %v56_v0  ;;  %v63_v6 = vand.u32 2147483647, %v57_v1 }
  0x1b   :  { %v60_v4 = vmul.f32 %v58_v2, %v56_v0  ;;  %v61_v7 = vmul.f32 %v59_v3, %v57_v1  ;;  %v69_v8 = vadd.f32 %v59_v3, %v58_v2  ;;  %s90_s19 = sshll.u32 %s177_s0, 4  ;;  %s91_s19 = int_to_ptr.vmem [resolvable:$true] %s90_s19 }
  0x1c   :  { %v68_v9 = vadd.f32 %v63_v6, %v62_v5  ;;  %s149_s1 = scalar_lea.vmem %s91_s19, 384  ;;  %p154_p11 = scmp.lt.s32.totalorder %s91_s19, %s91_s19 }
  0x1d   :  { %v67_v10 = vadd.f32 %v61_v7, %v60_v4  ;;  %80 = vst [vmem:[#allocation7 + $0x10] sm:$0xff] %v69_v8  ;;  %p150_p10 = scmp.ne.s32.totalorder %s91_s19, %s149_s1  ;;  %p155_p12 = scmp.lt.s32.totalorder %s149_s1, %s149_s1 }
  0x1e   :  { %76 = vst [vmem:[#allocation7 + $0x8] sm:$0xff] %v68_v9 }
  0x1f   :  { %72 = vst [vmem:[#allocation7] sm:$0xff] %v67_v10  ;;  %p156_p13 = por %p155_p12, %p154_p11 }
  0x21   :  { %p157_p0 = pnand %p156_p13, %p150_p10 }
  0x23   :  { %160 = shalt.err (!%p157_p0)
}
  0x24   :  { %s178_s20 = smov 128   ;;  %s179_s21 = smov 8  }
  0x25   :  { %96 = dma.vmem_to_hbm [thread:$0]  %s91_s19, 384, %s206_s2, [#allocation4], %s178_s20, %s178_s20, %s179_s21  }
  0x26   :  { %173 = dma.done.wait [#allocation4], 384  }
  0x27   :  { %174 = vsyncadd [#allocation4], 4294966912 }
  0x28   :  { %100 = vsyncpa [#allocation3], 1 }
  0x29   :  { %101 = vsyncpa [#allocation6], 1 }
  0x2a   :  { %102 = vsyncpa [#allocation4], 1 }

</bundles_post_ra>
